<compile_context>
chip_gen: v5e
topology: v5e:2x2
jax: 0.10.0
libtpu: 0.0.40
codegen_flags: <defaults>
</compile_context>

<pallas_src>
import functools

import jax
import jax.numpy as jnp
from jax.experimental import pallas as pl
from jax.experimental.pallas import tpu as pltpu

_LANE = 128
_SUBLANE = 8
# ~2x double-buffered input block + ~3x live f32 temporaries (exp result,
# roll/add temps).  Conservative; the row-chunk grid axis is the backstop.
_TEMP_FACTOR = 5


def _ceil_to(x, m):
    return -(-x // m) * m


def _chunk_f32_bytes(bt, tm, np_):
    """Padded f32 bytes of one (bt, tm, N*P) block."""
    return bt * _ceil_to(tm, _SUBLANE) * _ceil_to(np_, _LANE) * 4


def _vmem_capacity_bytes():
    try:
        cap = getattr(pltpu.get_tpu_info(), "vmem_capacity_bytes", None)
        if cap:
            return int(cap)
    except Exception:
        pass
    return 64 * 1024 * 1024  # v7x per-core floor: safe on every generation


def _choose_row_block(M, np_, budget_bytes):
    """Largest legal M-chunk (full M, or a multiple-of-8 divisor) fitting budget."""
    def fits(tm):
        return _TEMP_FACTOR * _chunk_f32_bytes(1, tm, np_) <= budget_bytes

    if fits(M):
        return M
    legal = [tm for tm in range(_SUBLANE, M, _SUBLANE) if M % tm == 0]
    fitting = [tm for tm in legal if fits(tm)]
    if fitting:
        return max(fitting)
    if legal:
        return min(legal)  # still over budget; minimizes VMEM pressure
    # TODO(synk): if M has no multiple-of-8 divisor and one row chunk still
    # exceeds VMEM, a group-aware N*P-axis chunking would be needed.
    return M


def _choose_batch_block(B, tm, np_, budget_bytes):
    """Largest divisor of B fitting budget while keeping >= 2 batch blocks
    (so the 'parallel' axis can shard across v7x's two TensorCores)."""
    bt = 1
    min_blocks = min(2, B)
    for cand in range(1, B + 1):
        if B % cand:
            continue
        if B // cand < min_blocks:
            continue
        if _TEMP_FACTOR * _chunk_f32_bytes(cand, tm, np_) <= budget_bytes:
            bt = cand
    return bt


def _mi_loss_kernel(phi_ref, out_ref, *scratch, epsilon, n_groups, p_dim,
                    num_row_blocks):
    bt, tm, np_ = phi_ref.shape

    def group_sum(e):
        # e: (bt, tm, N*P) f32 -> (bt, tm, P): sum the N contiguous width-P
        # groups along the lane axis without leaving the lane-dense layout.
        e2 = e.reshape(bt * tm, np_)
        if n_groups == 1:
            s2 = e2
        elif (n_groups & (n_groups - 1)) == 0 and np_ % _LANE == 0:
            # power-of-two N: log2(N) XLU lane rotations + VPU adds.
            acc = e2
            k = n_groups // 2
            while k >= 1:
                acc = acc + pltpu.roll(acc, shift=np_ - k * p_dim, axis=1)
                k //= 2
            s2 = acc[:, :p_dim]
        else:
            # general N: one small MXU matmul with a static 0/1 group-sum matrix.
            row = jax.lax.broadcasted_iota(jnp.int32, (np_, p_dim), 0)
            col = jax.lax.broadcasted_iota(jnp.int32, (np_, p_dim), 1)
            gmat = (row % p_dim == col).astype(jnp.float32)
            s2 = jnp.dot(e2, gmat, preferred_element_type=jnp.float32)
        return s2.reshape(bt, tm, p_dim)

    def finalize(s_mt):
        # s_mt: (num_row_blocks, bt, tm, P) un-normalized per-(m, p) exp sums.
        # Deferred normalization: only this small marginal is divided by Z.
        z = jnp.sum(s_mt, axis=(0, 2, 3), keepdims=True)       # (1, bt, 1, 1)
        p_mt = s_mt / z
        p_m = jnp.sum(p_mt, axis=3, keepdims=True)              # (g_r, bt, tm, 1)
        p_t = jnp.sum(p_mt, axis=(0, 2), keepdims=True)         # (1, bt, 1, P)
        log_term = jnp.log(p_mt + epsilon) - jnp.log(p_m * p_t + epsilon)
        mi = jnp.sum(p_mt * log_term)
        out_ref[...] = jnp.full(out_ref.shape, -mi, dtype=out_ref.dtype)

    if num_row_blocks == 1:
        # Lean single-pass path: one block holds the whole softmax row(s).
        x = phi_ref[...].astype(jnp.float32)
        x_max = jnp.max(x, axis=(1, 2), keepdims=True)           # per batch row
        e = jnp.exp(x - x_max)
        finalize(group_sum(e)[None])
    else:
        # Online-softmax path: rows are chunked along M (grid axis 1).
        smt_ref, rmax_ref = scratch
        r = pl.program_id(1)

        @pl.when(r == 0)
        def _init():
            smt_ref[...] = jnp.zeros_like(smt_ref)
            rmax_ref[...] = jnp.full(rmax_ref.shape, -jnp.inf, rmax_ref.dtype)

        x = phi_ref[...].astype(jnp.float32)
        c_max = jnp.max(x, axis=(1, 2), keepdims=True)           # (bt, 1, 1)
        new_max = jnp.maximum(rmax_ref[...], c_max)
        alpha = jnp.exp(rmax_ref[...] - new_max)                 # rescale factor
        smt_ref[...] = smt_ref[...] * alpha[None]
        smt_ref[r] = group_sum(jnp.exp(x - new_max))
        rmax_ref[...] = new_max

        @pl.when(r == num_row_blocks - 1)
        def _final():
            finalize(smt_ref[...])


def mutual_information_loss(phi, epsilon=1e-10, *, input_dtype=None,
                            row_block=None):
    """Negative mutual information of the routing distribution phi (B, M, N, P).

    input_dtype: optionally down-cast the kernel input (e.g. jnp.bfloat16) to
      halve HBM traffic on HBM-bound v5e/v6e; in-kernel math stays f32.
      Leave None on v7x (EUP-bound) and for exact-f32 comparisons.
    row_block: override the M-chunk size (must divide M; multiple of 8 or M).
    """
    B, M, N, P = phi.shape
    NP = N * P

    if input_dtype is not None:
        phi = phi.astype(input_dtype)

    # Lane-dense view: merging the trailing (N, P) dims is a free reshape and
    # maps N*P (instead of just P) onto the 128-wide lane axis.
    phi2 = phi.reshape(B, M, NP)

    cap = _vmem_capacity_bytes()
    budget = int(cap * 0.45)
    vmem_limit = int(cap * 0.75)

    tm = row_block if row_block is not None else _choose_row_block(M, NP, budget)
    assert M % tm == 0 and (tm == M or tm % _SUBLANE == 0), (M, tm)
    bt = _choose_batch_block(B, tm, NP, budget)
    g_b = B // bt
    g_r = M // tm

    kernel = functools.partial(
        _mi_loss_kernel, epsilon=float(epsilon), n_groups=N, p_dim=P,
        num_row_blocks=g_r)

    scratch = []
    if g_r > 1:
        scratch = [pltpu.VMEM((g_r, bt, tm, P), jnp.float32),   # s_mt accumulator
                   pltpu.VMEM((bt, 1, 1), jnp.float32)]         # running row max

    partials = pl.pallas_call(
        kernel,
        out_shape=jax.ShapeDtypeStruct((g_b, _SUBLANE, _LANE), jnp.float32),
        grid_spec=pltpu.PrefetchScalarGridSpec(
            num_scalar_prefetch=0,
            grid=(g_b, g_r),
            in_specs=[pl.BlockSpec((bt, tm, NP), lambda b, r: (b, r, 0))],
            out_specs=pl.BlockSpec((1, _SUBLANE, _LANE), lambda b, r: (b, 0, 0)),
            scratch_shapes=scratch,
        ),
        compiler_params=pltpu.CompilerParams(
            dimension_semantics=("parallel", "arbitrary"),
            vmem_limit_bytes=vmem_limit,
        ),
    )(phi2)

    # Sum of per-batch-block (already negated) partial MI values -> scalar loss.
    return jnp.sum(partials[:, 0, 0])


def _reference(phi, epsilon=1e-10):
    B, M, N, P = phi.shape
    flat = phi.reshape(B, M * N * P).astype(jnp.float32)
    sm = jax.nn.softmax(flat, axis=1).reshape(B, M, N, P)
    p_m = sm.sum(axis=(2, 3))
    p_t = sm.sum(axis=(1, 2))
    p_mt = sm.sum(axis=2)
    denom = p_m[:, :, None] * p_t[:, None, :]
    log_term = jnp.log((p_mt + epsilon) / (denom + epsilon))
    return -jnp.sum(p_mt * log_term)


if __name__ == "__main__":
    # 1) Module-default shape: lean single-chunk path, roll-tree N reduction.
    key = jax.random.PRNGKey(0)
    B, M, N, P = 2, 4, 8, 16
    phi = jax.random.normal(key, (B, M, N, P), dtype=jnp.float32)
    loss = jax.block_until_ready(mutual_information_loss(phi))
    ref = _reference(phi)
    assert jnp.allclose(loss, ref, atol=2e-5, rtol=2e-5), (loss, ref)

    # 2) Exercise the chunked-row online-softmax path and BT>1 batching.
    phi2 = jax.random.normal(jax.random.PRNGKey(1), (4, 16, 8, 16), jnp.float32)
    loss2 = jax.block_until_ready(mutual_information_loss(phi2, row_block=8))
    ref2 = _reference(phi2)
    assert jnp.allclose(loss2, ref2, atol=2e-5, rtol=2e-5), (loss2, ref2)

    # 3) Exercise the non-power-of-two-N (MXU group-sum) path.
    phi3 = jax.random.normal(jax.random.PRNGKey(2), (2, 4, 6, 16), jnp.float32)
    loss3 = jax.block_until_ready(mutual_information_loss(phi3))
    ref3 = _reference(phi3)
    assert jnp.allclose(loss3, ref3, atol=2e-5, rtol=2e-5), (loss3, ref3)

    print("KERNEL_OK")
</pallas_src>

<mosaic_0001>
module attributes {stable_mosaic.version = 11 : i64} {
  func.func @_mi_loss_kernel(%arg0: i32, %arg1: i32, %arg2: memref<1x4x128xf32, #tpu.memory_space<vmem>>, %arg3: memref<1x8x128xf32, #tpu.memory_space<vmem>>) attributes {dimension_semantics = [#tpu.dimension_semantics<parallel>, #tpu.dimension_semantics<arbitrary>], iteration_bounds = array<i64: 2, 1>, scalar_prefetch = 0 : i64, scratch_operands = 0 : i64, tpu.core_type = #tpu.core_type<tc>, window_params = [{transform_indices = @transform_0, window_bounds = array<i64: 1, 4, 128>}, {transform_indices = @transform_1, window_bounds = array<i64: 1, 8, 128>}]} {
    %c0 = arith.constant 0 : index
    %c0_0 = arith.constant 0 : index
    %c0_1 = arith.constant 0 : index
    %0 = vector.load %arg2[%c0, %c0_0, %c0_1] : memref<1x4x128xf32, #tpu.memory_space<vmem>>, vector<1x4x128xf32>
    %cst = arith.constant dense<0xFF800000> : vector<1xf32>
    %1 = vector.multi_reduction <maximumf>, %0, %cst [1, 2] : vector<1x4x128xf32> to vector<1xf32>
    %2 = vector.shape_cast %1 : vector<1xf32> to vector<1x1x1xf32>
    %3 = vector.broadcast %2 : vector<1x1x1xf32> to vector<1x4x128xf32>
    %4 = arith.subf %0, %3 : vector<1x4x128xf32>
    %5 = math.exp %4 : vector<1x4x128xf32>
    %6 = vector.shape_cast %5 : vector<1x4x128xf32> to vector<4x128xf32>
    %c64_i32 = arith.constant 64 : i32
    %7 = tpu.dynamic_rotate %6 by %c64_i32 dim 1 : vector<4x128xf32>, i32 -> vector<4x128xf32>
    %8 = arith.addf %6, %7 : vector<4x128xf32>
    %c96_i32 = arith.constant 96 : i32
    %9 = tpu.dynamic_rotate %8 by %c96_i32 dim 1 : vector<4x128xf32>, i32 -> vector<4x128xf32>
    %10 = arith.addf %8, %9 : vector<4x128xf32>
    %c112_i32 = arith.constant 112 : i32
    %11 = tpu.dynamic_rotate %10 by %c112_i32 dim 1 : vector<4x128xf32>, i32 -> vector<4x128xf32>
    %12 = arith.addf %10, %11 : vector<4x128xf32>
    %13 = vector.extract_strided_slice %12 {offsets = [0, 0], sizes = [4, 16], strides = [1, 1]} : vector<4x128xf32> to vector<4x16xf32>
    %14 = vector.shape_cast %13 : vector<4x16xf32> to vector<1x4x16xf32>
    %15 = vector.shape_cast %14 : vector<1x4x16xf32> to vector<1x1x4x16xf32>
    %cst_2 = arith.constant dense<0.000000e+00> : vector<1xf32>
    %16 = vector.multi_reduction <add>, %15, %cst_2 [0, 2, 3] : vector<1x1x4x16xf32> to vector<1xf32>
    %17 = vector.shape_cast %16 : vector<1xf32> to vector<1x1x1x1xf32>
    %18 = vector.broadcast %17 : vector<1x1x1x1xf32> to vector<1x1x4x16xf32>
    %19 = arith.divf %15, %18 : vector<1x1x4x16xf32>
    %cst_3 = arith.constant dense<0.000000e+00> : vector<1x1x4xf32>
    %20 = vector.multi_reduction <add>, %19, %cst_3 [3] : vector<1x1x4x16xf32> to vector<1x1x4xf32>
    %21 = vector.shape_cast %20 : vector<1x1x4xf32> to vector<1x1x4x1xf32>
    %cst_4 = arith.constant dense<0.000000e+00> : vector<1x16xf32>
    %22 = vector.multi_reduction <add>, %19, %cst_4 [0, 2] : vector<1x1x4x16xf32> to vector<1x16xf32>
    %23 = vector.shape_cast %22 : vector<1x16xf32> to vector<1x1x1x16xf32>
    %cst_5 = arith.constant 1.000000e-10 : f32
    %24 = vector.broadcast %cst_5 : f32 to vector<1x1x4x16xf32>
    %25 = arith.addf %19, %24 : vector<1x1x4x16xf32>
    %26 = math.log %25 : vector<1x1x4x16xf32>
    %27 = vector.broadcast %21 : vector<1x1x4x1xf32> to vector<1x1x4x16xf32>
    %28 = vector.broadcast %23 : vector<1x1x1x16xf32> to vector<1x1x4x16xf32>
    %29 = arith.mulf %27, %28 : vector<1x1x4x16xf32>
    %cst_6 = arith.constant 1.000000e-10 : f32
    %30 = vector.broadcast %cst_6 : f32 to vector<1x1x4x16xf32>
    %31 = arith.addf %29, %30 : vector<1x1x4x16xf32>
    %32 = math.log %31 : vector<1x1x4x16xf32>
    %33 = arith.subf %26, %32 : vector<1x1x4x16xf32>
    %34 = arith.mulf %19, %33 : vector<1x1x4x16xf32>
    %35 = vector.shape_cast %34 : vector<1x1x4x16xf32> to vector<1x1x1x4x16xf32>
    %cst_7 = arith.constant dense<0.000000e+00> : vector<1xf32>
    %36 = vector.multi_reduction <add>, %35, %cst_7 [1, 2, 3, 4] : vector<1x1x1x4x16xf32> to vector<1xf32>
    %37 = vector.shape_cast %36 : vector<1xf32> to vector<1x1x1x1x1xf32>
    %38 = vector.extract %37[0, 0, 0, 0, 0] : f32 from vector<1x1x1x1x1xf32>
    %cst_8 = arith.constant 0.000000e+00 : f32
    %39 = arith.subf %cst_8, %38 : f32
    %40 = vector.broadcast %39 : f32 to vector<1x8x128xf32>
    %c0_9 = arith.constant 0 : index
    %c0_10 = arith.constant 0 : index
    %c0_11 = arith.constant 0 : index
    %41 = vector.load %arg3[%c0_9, %c0_10, %c0_11] : memref<1x8x128xf32, #tpu.memory_space<vmem>>, vector<1x8x128xf32>
    tpu.vector_store %arg3[%c0_9, %c0_10, %c0_11], %40 {strides = array<i32>} : memref<1x8x128xf32, #tpu.memory_space<vmem>>, vector<1x8x128xf32>,
    return
  }
  func.func @transform_0(%arg0: i32, %arg1: i32) -> (i32, i32, i32) {
    %c0_i32 = arith.constant 0 : i32
    %c0_i32_0 = arith.constant 0 : i32
    return %arg0, %arg1, %c0_i32 : i32, i32, i32
  }
  func.func @transform_1(%arg0: i32, %arg1: i32) -> (i32, i32, i32) {
    %c0_i32 = arith.constant 0 : i32
    %c0_i32_0 = arith.constant 0 : i32
    %c0_i32_1 = arith.constant 0 : i32
    return %arg0, %c0_i32, %c0_i32_0 : i32, i32, i32
  }
}

</mosaic_0001>

<bundles_post_ra>
// kernel: tpu_custom_call.1
= control target key start
LH: loop header
LB: loop body
LE: loop exit
PB: predicated region body
PF: predicated region fallthrough
CT: control target
= control target key end

     0   :  { %6 = vsyncpa [#allocation3], 0  ;;  %s659_s0 = inlined_call_operand.hbm [shape: f32[2,4,128], index: 0, kind: input, shape index: {}]   ;;  %s660_s1 = inlined_call_operand.hbm [shape: f32[2,8,128], index: 1, kind: output, shape index: {}]  }
   0x1   :  { %8 = vsyncpa [#allocation3 + $0x1], 0 }
   0x2   :  { %9 = vsyncpa [#allocation4], 0 }
   0x3   :  { %11 = vsyncpa [#allocation4 + $0x1], 0  ;;  %s535_s6 = smov 0   ;;  %s537_s7 = smov 0  }
   0x4   :  { %s539_s8 = smov 0   ;;  %s541_s9 = smov 0  }
   0x5   :  { %s543_s10 = smov 0   ;;  %s545_s11 = smov 0  }
   0x6 LB: > { %s320_s12 = sadd.s32 4294967295, %s520_s11   ;;  %s321_s13 = sadd.s32 4294967294, %s520_s11   ;;  %s520_s11 = sphi %s545_s11, %s17_s11   ;;  %s516_s10 = sphi %s543_s10, %s669_s10   ;;  %s512_s9 = sphi %s541_s9, %s668_s9   ;;  %s508_s8 = sphi %s539_s8, %s667_s8   ;;  %s504_s7 = sphi %s537_s7, %s666_s7   ;;  %s500_s6 = sphi %s535_s6, %s665_s6  }
   0x7   : > { %s29_s14 = sadd.s32 1, %s516_s10  ;;  %s38_s15 = sadd.s32 1, %s508_s8 }
   0x8   : > { %p31_p0 = scmp.ge.s32.totalorder %s29_s14, 2  ;;  %p45_p1 = scmp.ne.s32.totalorder %s508_s8, %s504_s7 }
   0x9   : > { %p46_p2 = scmp.eq.s32.totalorder %s520_s11, 0  ;;  %p51_p3 = scmp.ne.s32.totalorder %s504_s7, %s500_s6 }
   0xa   : > { %s671_s14 = smov (%p31_p0, %s29_s14), 0  ;;  %p52_p5 = scmp.eq.s32.totalorder %s320_s12, 0 }
   0xb   : > { %p576_p4 = por %p46_p2, %p45_p1  ;;  %s33_s17 = ssub.s32 %s516_s10, %s671_s14 }
   0xc   : > { %p75_p6 = scmp.eq.s32.totalorder %s320_s12, 1  ;;  %p36_p7 = scmp.eq.s32.totalorder %s33_s17, 0 }
   0xd   : > { %p582_p8 = por %p52_p5, %p51_p3  ;;  %p81_p10 = scmp.eq.s32.totalorder %s321_s13, 1 }
   0xe   : > { %p586_p9 = por %p75_p6, %p45_p1  ;;  %p323_p12 = scmp.ge.s32.totalorder %s520_s11, 2 }
   0xf   : > { %s591_s20 = scalar_select %p36_p7, %s508_s8, %s38_s15  }
  0x10   : > { %p593_p11 = por %p81_p10, %p51_p3  ;;  %p347_p13 = scmp.lt.s32.totalorder %s520_s11, 2 }
  0x11   : > { %s101_s22 = sand.u32 1, %s508_s8   ;;  %s325_s24 = sshll.u32 %s516_s10, 2 }
  0x12   : > { %s324_s23 = sshll.u32 %s101_s22, 2  ;;  %s110_s27 = scalar_lea.hbm %s659_s0, %s325_s24 }
  0x13   : > { %s105_s28 = scalar_lea.vmem [#allocation2], %s324_s23  ;;  %s112_s30 = sshll.u32 %s110_s27, 4  ;;  %s113_s30 = int_to_ptr.hbm [resolvable:$true] %s112_s30 }
  0x14   : > { %s114_s29 = sshll.u32 %s105_s28, 4  ;;  %p340_p0 = pnand %p347_p13, %p576_p4  ;;  %s115_s29 = int_to_ptr.vmem [resolvable:$true] %s114_s29 }
  0x15   : > { %p326_p1 = scmp.ge.s32.totalorder %s520_s11, 1  ;;  %p119_p2 = scmp.lt.s32.totalorder %s520_s11, 3 }
  0x16   : > { %s102_s2 = scalar_lea.sflag [#allocation3], %s101_s22 }
  0x17   : > { %342 = dma.hbm_to_vmem [thread:$0]  (!%p340_p0), %s113_s30, 64, %s115_s29, %s102_s2  }
  0x18   : > { %p120_p3 = pnand %p326_p1, %p119_p2 }
  0x19   : > { %s609_s3 = sand.u32 (!%p120_p3), 1, %s504_s7  }
  0x1a   : > { %123 = sbr.rel (%p120_p3) target bundleno = 991 (0x3df), region = 24  ;;  %s327_s4 = sshll.u32 (!%p120_p3), %s609_s3, 2 }
  0x1b   : > { %s126_s5 = scalar_lea.sflag (!%p120_p3), [#allocation3], %s609_s3  ;;  %s129_s12 = scalar_lea.vmem (!%p120_p3), [#allocation2], %s327_s4 }
  0x1f   : > { %491 = dma.done.wait (%p582_p8), %s126_s5, 64  }
  0x20   : > { %493 = vsyncadd (%p582_p8), %s126_s5, 4294967232  ;;  %vm150_vm0 = vcmask 1043456   ;;  %v149_v0 = vld [vmem:[%s129_s12] sm:$0xf]  ;;  %s522_s13 = smov 64   ;;  %s523_s15 = smov 96  }
  0x21   : > { %v151_v1 = vsel %vm150_vm0, %v149_v0, -inf  ;;  %s524_s16 = smov 112   ;;  %vm172_vm1 = vcmask 125952   ;;  %s328_s17 = sshll.u32 %s609_s3, 3 }
  0x22   : > { %152 = vmax.xlane.f32.xlu0 %v151_v1  ;;  %s330_s18 = sshll.u32 %s512_s9, 3  ;;  %s148_s25 = scalar_lea.vmem [#allocation5], %s328_s17 }
  0x23   : > { %s239_s24 = scalar_lea.hbm %s660_s1, %s330_s18  ;;  %s241_s26 = sshll.u32 %s148_s25, 4  ;;  %s242_s26 = int_to_ptr.vmem [resolvable:$true] %s241_s26 }
  0x24   : > { %s243_s27 = sshll.u32 %s239_s24, 4  ;;  %s229_s30 = scalar_lea.sflag [#allocation4], %s609_s3  ;;  %s244_s27 = int_to_ptr.hbm [resolvable:$true] %s243_s27 }
  0x25   : > { %s452_s2 = sshra.s32 %s244_s27, 4  ;;  %s458_s12 = scalar_lea.hbm %s660_s1, 16  ;;  %s453_s2 = int_to_ptr.hbm [resolvable:$true] %s452_s2 }
  0x26   : > { %s454_s4 = scalar_lea.hbm %s453_s2, 8  ;;  %p459_p7 = scmp.lt.s32.totalorder %s453_s2, %s660_s1 }
  0x27   : > { %p455_p4 = scmp.ne.s32.totalorder %s453_s2, %s454_s4  ;;  %p460_p8 = scmp.lt.s32.totalorder %s458_s12, %s454_s4 }
  0x29   : > { %p456_p5 = pnand %p455_p4, %p586_p9  ;;  %p461_p10 = por %p460_p8, %p459_p7 }
  0x2b   : > { %p457_p6 = pneg %p456_p5 }
  0x2d   : > { %p462_p13 = pnand %p461_p10, %p457_p6 }
  0x95   : > { %v153_v2 = vpop.xlane.xlu0 %152 }
  0x96   : > { %v154_v3 = vrot.slane %v153_v2, 4 }
  0x98   : > { %v155_v4 = vmax.f32 %v153_v2, %v154_v3 }
  0x9a   : > { %v156_v5 = vrot.slane %v155_v4, 2 }
  0x9c   : > { %v157_v6 = vmax.f32 %v155_v4, %v156_v5 }
  0x9e   : > { %v158_v7 = vrot.slane %v157_v6, 1 }
  0xa0   : > { %v159_v8 = vmax.f32 %v157_v6, %v158_v7 }
  0xa2   : > { %v160_v9 = vsub.f32 %v149_v0, %v159_v8 }
  0xa4   : > { %v161_v10 = vmul.f32 1.442695, %v160_v9 }
  0xa6   : > { %400 = vpow2.f32 %v161_v10 }
  0xac   : > { %v401_v11 = vpop.eup %400 }
  0xad   : > { %163 = vrot.lane.b32.xlu0 %v401_v11, %s522_s13 }
 0x11f   : > { %v164_v12 = vpop.permute.xlu0 %163 }
 0x120   : > { %v165_v13 = vadd.f32 %v401_v11, %v164_v12 }
 0x122   : > { %166 = vrot.lane.b32.xlu1 %v165_v13, %s523_s15 }
 0x194   : > { %v167_v14 = vpop.permute.xlu1 %166 }
 0x195   : > { %v168_v15 = vadd.f32 %v167_v14, %v165_v13 }
 0x197   : > { %169 = vrot.lane.b32.xlu1 %v168_v15, %s524_s16 }
 0x209   : > { %v170_v16 = vpop.permute.xlu1 %169 }
 0x20a   : > { %v171_v17 = vadd.f32 %v170_v16, %v168_v15 }
 0x20c   : > { %v173_v18 = vsel %vm172_vm1, %v171_v17, 0.0 }
 0x20d   : > { %174 = vadd.xlane.f32.xlu2 %v173_v18 }
 0x280   : > { %v175_v19 = vpop.xlane.xlu2 %174 }
 0x281   : > { %v176_v20 = vrot.slane %v175_v19, 4 }
 0x283   : > { %v177_v21 = vadd.f32 %v176_v20, %v175_v19 }
 0x285   : > { %v178_v22 = vrot.slane %v177_v21, 2 }
 0x287   : > { %v179_v23 = vadd.f32 %v178_v22, %v177_v21 }
 0x289   : > { %v180_v24 = vrot.slane %v179_v23, 1 }
 0x28b   : > { %v181_v25 = vadd.f32 %v180_v24, %v179_v23 }
 0x28d   : > { %402 = vrcp.f32 %v181_v25  ;;  %v193_v29 = vand.u32 2147483648, %v181_v25  ;;  %v191_v31 = vand.u32 2147483647, %v181_v25  ;;  %vm187_vm3 = vweird.f32 %v181_v25 }
 0x28f   : > { %v194_v33 = vor.u32 1.1754944e-38, %v193_v29  ;;  %vm192_vm5 = vcmp.eq.f32.partialorder %v191_v31, 8.507059e+37 }
 0x293   : > { %v403_v26 = vpop.eup %402 }
 0x294   : > { %v183_v27 = vmul.f32 %v403_v26, %v181_v25  ;;  %vm188_vm2 = vweird.f32 %v403_v26 }
 0x295   : > { %vm189_vm4 = vmor %vm187_vm3, %vm188_vm2 }
 0x296   : > { %v184_v28 = vsub.f32 1.0, %v183_v27 }
 0x298   : > { %v185_v30 = vmul.f32 %v403_v26, %v184_v28 }
 0x29a   : > { %v186_v32 = vadd.f32 %v403_v26, %v185_v30 }
 0x29c   : > { %v190_v34 = vsel %vm189_vm4, %v403_v26, %v186_v32 }
 0x29d   : > { %v195_v35 = vsel %vm192_vm5, %v194_v33, %v190_v34 }
 0x29e   : > { %v196_v36 = vmul.f32 %v195_v35, %v171_v17 }
 0x2a0   : > { %v197_v37 = vsel %vm172_vm1, %v196_v36, 0.0  ;;  %v206_v44 = vadd.f32 1e-10, %v196_v36 }
 0x2a1   : > { %198 = vadd.xlane.f32.xlu2 %v197_v37  ;;  %v200_v38 = vrot.slane %v197_v37, 4 }
 0x2a2   : > { %404 = vlog2.f32 %v206_v44 }
 0x2a3   : > { %v201_v39 = vadd.f32 %v200_v38, %v197_v37 }
 0x2a5   : > { %v202_v40 = vrot.slane %v201_v39, 2 }
 0x2a7   : > { %v203_v41 = vadd.f32 %v202_v40, %v201_v39 }
 0x2a8   : > { %v405_v48 = vpop.eup %404 }
 0x2a9   : > { %v204_v42 = vrot.slane %v203_v41, 1  ;;  %v208_v51 = vmul.f32 0.6931472, %v405_v48 }
 0x2ab   : > { %v205_v43 = vadd.f32 %v204_v42, %v203_v41 }
 0x314   : > { %v199_v45 = vpop.xlane.xlu2 %198 }
 0x315   : > { %v209_v46 = vmul.f32 %v205_v43, %v199_v45 }
 0x317   : > { %v210_v47 = vadd.f32 1e-10, %v209_v46 }
 0x319   : > { %406 = vlog2.f32 %v210_v47 }
 0x31f   : > { %v407_v49 = vpop.eup %406 }
 0x320   : > { %v212_v50 = vmul.f32 0.6931472, %v407_v49 }
 0x322   : > { %v213_v52 = vsub.f32 %v208_v51, %v212_v50 }
 0x324   : > { %v214_v53 = vmul.f32 %v213_v52, %v196_v36 }
 0x326   : > { %v215_v54 = vsel %vm172_vm1, %v214_v53, 0.0 }
 0x327   : > { %216 = vadd.xlane.f32.xlu1 %v215_v54 }
 0x39a   : > { %v217_v55 = vpop.xlane.xlu1 %216 }
 0x39b   : > { %v218_v56 = vrot.slane %v217_v55, 4 }
 0x39d   : > { %v219_v57 = vadd.f32 %v218_v56, %v217_v55 }
 0x39f   : > { %v220_v58 = vrot.slane %v219_v57, 2 }
 0x3a1   : > { %v221_v59 = vadd.f32 %v220_v58, %v219_v57 }
 0x3a3   : > { %v222_v60 = vrot.slane %v221_v59, 1 }
 0x3a5   : > { %v223_v61 = vadd.f32 %v222_v60, %v221_v59 }
 0x3a7   : > { %333 = vpush %v223_v61 }
 0x3d8   : > { %s334_s28 = spop %333 }
 0x3d9   : > { %s225_s29 = ssub.f32 0.0, %s334_s28 }
 0x3db   : > { %v226_v62 = vstv %s225_s29 }
 0x3dc   : > { %227 = vst [vmem:[%s148_s25] sm:$0xff] %v226_v62 }
 0x3dd   : > { %465 = shalt.err (!%p462_p13)
}
 0x3de   : > { %337 = dma.vmem_to_hbm [thread:$0]  (%p586_p9), %s242_s26, 128, %s244_s27, %s229_s30  }
 0x3df PF: > { %s255_s3 = sand.u32 1, %s500_s6   ;;  %p344_p0 = pnand %p323_p12, %p593_p11 }
 0x3e0   : > { %s256_s16 = scalar_lea.sflag [#allocation4], %s255_s3 }
 0x3e1   : > { %p345_p1 = pneg %p344_p0 }
 0x3e3   : > { %495 = dma.done.wait (%p345_p1), %s256_s16, 128  }
 0x3e4   : > { %497 = vsyncadd (%p345_p1), %s256_s16, 4294967168  ;;  %s17_s11 = sadd.s32 1, %s520_s11   ;;  %s665_s6 = smov %s504_s7 }
 0x3e5   : > { %p14_p2 = scmp.ge.s32.totalorder %s17_s11, 4   ;;  %s666_s7 = smov %s508_s8 }
 0x3e6   : > { %s667_s8 = smov %s591_s20  ;;  %s668_s9 = smov %s516_s10 }
 0x3e7   : > { %s669_s10 = smov %s671_s14  ;;  %16 = sbr.rel (!%p14_p2) target bundleno = 6 (0x6), region = 69 }
 0x3ec   :  { %262 = vsyncpa [#allocation3], 1 }
 0x3ed   :  { %264 = vsyncpa [#allocation3 + $0x1], 1 }
 0x3ee   :  { %265 = vsyncpa [#allocation4], 1 }
 0x3ef   :  { %267 = vsyncpa [#allocation4 + $0x1], 1 }

</bundles_post_ra>
